<compile_context>
chip_gen: v7x
topology: tpu7x:2x2x1
jax: 0.10.0
libtpu: 0.0.40
codegen_flags: <defaults>
</compile_context>

<pallas_src>
import jax
import jax.numpy as jnp
from jax.experimental import pallas as pl
from jax.experimental.pallas import tpu as pltpu

NB_ACTIONS = 2
NB_OBSERVATIONS = 4
DEFAULT_BLOCK_B = 4096               # batch columns (lanes) per grid step
DEFAULT_VMEM_LIMIT = 48 * 1024 * 1024  # below v7x's 64 MiB/TC, above v5e's 16 MiB default


def dueling_q_kernel(x_ref,
                     w1_ref, b1_ref,
                     w2_ref, b2_ref,
                     w3_ref, b3_ref,
                     wq_ref, bq_ref,
                     out_ref):
    # Feature-major: x is (4, TB), batch on lanes.  Trunk compute dtype follows
    # the trunk weights (f32 default; bf16 optional on v6e/v7x); all matmuls
    # accumulate in f32 on the MXU.
    cdt = w1_ref.dtype
    x = x_ref[...].astype(cdt)                                             # (4, TB)

    # shared trunk: Linear -> ReLU -> Linear -> ReLU -> Linear
    h = jnp.dot(w1_ref[...], x, preferred_element_type=jnp.float32) + b1_ref[...]
    h = jnp.maximum(h, 0.0)                                                # (128, TB)
    h = jnp.dot(w2_ref[...], h.astype(cdt),
                preferred_element_type=jnp.float32) + b2_ref[...]
    h = jnp.maximum(h, 0.0)                                                # (64, TB)
    h = jnp.dot(w3_ref[...], h.astype(cdt),
                preferred_element_type=jnp.float32) + b3_ref[...]
    # No ReLU on the trunk output in the torch module; both heads apply their
    # own leading ReLU, which is this single ReLU on the shared trunk output:
    hr = jnp.maximum(h, 0.0)                                               # (64, TB)

    # fused dueling head: Q = V + A - mean(A)  ==  Wq @ hr + bq  (see wrapper)
    out_ref[...] = (jnp.dot(wq_ref[...], hr.astype(wq_ref.dtype),
                            preferred_element_type=jnp.float32)
                    + bq_ref[...])                                          # (2, TB)


def _fuse_dueling_head(wa, ba, wv, bv):
    """Exact algebraic fusion of V + A - mean(A) into one (nb_actions, 64) head.

    wa: (2, 64), ba: (2, 1), wv: (1, 64), bv: (1, 1) in torch (out, in) layout.
    """
    wq = wv + wa - jnp.mean(wa, axis=0, keepdims=True)    # (2, 64)
    bq = bv + ba - jnp.mean(ba, axis=0, keepdims=True)    # (2, 1)
    return wq, bq


def dueling_q_forward_fm(x_fm, params, *, block_b=DEFAULT_BLOCK_B,
                         vmem_limit_bytes=DEFAULT_VMEM_LIMIT):
    """Feature-major fast path: x_fm (nb_observations, B) -> Q (nb_actions, B)."""
    (w1, b1, w2, b2, w3, b3, wa, ba, wv, bv) = params
    wq, bq = _fuse_dueling_head(wa, ba, wv, bv)

    F, B = x_fm.shape
    assert F == NB_OBSERVATIONS

    if B <= block_b:
        tb = B                     # single block: lane dim equals full array dim
    else:
        tb = block_b               # multiple of 128 -> lane-aligned tiles
    grid = (pl.cdiv(B, tb),)       # partial last tile handled by bounded DMAs

    # weights/biases: full-array blocks with constant index_maps -> pinned in
    # VMEM across the whole batch grid (no per-step re-DMA).
    def pinned(arr):
        return pl.BlockSpec(arr.shape, lambda i: (0, 0))

    out = pl.pallas_call(
        dueling_q_kernel,
        out_shape=jax.ShapeDtypeStruct((NB_ACTIONS, B), jnp.float32),
        grid=grid,
        in_specs=[
            pl.BlockSpec((NB_OBSERVATIONS, tb), lambda i: (0, i)),  # x: tiled over lanes
            pinned(w1), pinned(b1),
            pinned(w2), pinned(b2),
            pinned(w3), pinned(b3),
            pinned(wq), pinned(bq),
        ],
        out_specs=pl.BlockSpec((NB_ACTIONS, tb), lambda i: (0, i)),
        compiler_params=pltpu.CompilerParams(
            dimension_semantics=("parallel",),   # v7x: >=2 grid steps split across 2 TCs
            vmem_limit_bytes=vmem_limit_bytes),
    )(x_fm, w1, b1, w2, b2, w3, b3, wq, bq)

    return out


def dueling_q_forward(x, params, **kwargs):
    """Batch-major convenience wrapper matching torch: x (B, nb_obs) -> (B, nb_actions).

    For peak performance feed feature-major data to dueling_q_forward_fm
    directly and keep Q feature-major; these two transposes are tiny XLA ops.
    """
    return dueling_q_forward_fm(x.T, params, **kwargs).T


def init_params(key):
    """Deterministic init mimicking torch.nn.Linear default U[-1/sqrt(fan_in), +1/sqrt(fan_in)].

    Weights stored in torch layout (out_features, in_features); biases (out, 1)."""
    def linear(key, fan_in, fan_out):
        kw, kb = jax.random.split(key)
        bound = 1.0 / (float(fan_in) ** 0.5)
        w = jax.random.uniform(kw, (fan_out, fan_in), jnp.float32, -bound, bound)
        b = jax.random.uniform(kb, (fan_out, 1), jnp.float32, -bound, bound)
        return w, b

    k1, k2, k3, ka, kv = jax.random.split(key, 5)
    w1, b1 = linear(k1, NB_OBSERVATIONS, 128)
    w2, b2 = linear(k2, 128, 64)
    w3, b3 = linear(k3, 64, 64)
    wa, ba = linear(ka, 64, NB_ACTIONS)
    wv, bv = linear(kv, 64, 1)
    return (w1, b1, w2, b2, w3, b3, wa, ba, wv, bv)


def reference_forward(x, params):
    """Plain-JAX reference matching the PyTorch semantics exactly (unfused heads)."""
    (w1, b1, w2, b2, w3, b3, wa, ba, wv, bv) = params
    h = jnp.maximum(x @ w1.T + b1.T, 0.0)
    h = jnp.maximum(h @ w2.T + b2.T, 0.0)
    h = h @ w3.T + b3.T
    hr = jnp.maximum(h, 0.0)
    adv = hr @ wa.T + ba.T
    val = hr @ wv.T + bv.T
    return val + adv - jnp.mean(adv, axis=1, keepdims=True)


if __name__ == "__main__":
    key = jax.random.PRNGKey(0)
    k_params, k_x1, k_x2, k_x3 = jax.random.split(key, 4)

    params = init_params(k_params)

    # 1) small batch: single-block path (block == full array dims)
    x_small = jax.random.normal(k_x1, (8, NB_OBSERVATIONS), jnp.float32)
    out_small = jax.block_until_ready(dueling_q_forward(x_small, params))
    ref_small = reference_forward(x_small, params)
    assert out_small.shape == (8, NB_ACTIONS)
    assert jnp.allclose(out_small, ref_small, atol=1e-4, rtol=1e-5), "mismatch (B=8)"

    # 2) tiled path: 4 clean 128-lane tiles over the batch
    x_mid = jax.random.normal(k_x2, (512, NB_OBSERVATIONS), jnp.float32)
    out_mid = jax.block_until_ready(dueling_q_forward(x_mid, params, block_b=128))
    ref_mid = reference_forward(x_mid, params)
    assert out_mid.shape == (512, NB_ACTIONS)
    assert jnp.allclose(out_mid, ref_mid, atol=1e-4, rtol=1e-5), "mismatch (B=512)"

    # 3) ragged batch via the feature-major fast path: grid=cdiv(300,128)=3,
    #    partial last tile handled by bounded DMAs (no host-side jnp.pad).
    x_rag = jax.random.normal(k_x3, (300, NB_OBSERVATIONS), jnp.float32)
    out_rag = jax.block_until_ready(
        dueling_q_forward_fm(x_rag.T, params, block_b=128))
    ref_rag = reference_forward(x_rag, params)
    assert out_rag.shape == (NB_ACTIONS, 300)
    assert jnp.allclose(out_rag.T, ref_rag, atol=1e-4, rtol=1e-5), "mismatch (B=300)"

    print("KERNEL_OK")
</pallas_src>

<mosaic_0001>
module attributes {stable_mosaic.version = 11 : i64} {
  func.func @dueling_q_kernel(%arg0: i32, %arg1: memref<4x8xf32, #tpu.memory_space<vmem>>, %arg2: memref<128x4xf32, #tpu.memory_space<vmem>>, %arg3: memref<128x1xf32, #tpu.memory_space<vmem>>, %arg4: memref<64x128xf32, #tpu.memory_space<vmem>>, %arg5: memref<64x1xf32, #tpu.memory_space<vmem>>, %arg6: memref<64x64xf32, #tpu.memory_space<vmem>>, %arg7: memref<64x1xf32, #tpu.memory_space<vmem>>, %arg8: memref<2x64xf32, #tpu.memory_space<vmem>>, %arg9: memref<2x1xf32, #tpu.memory_space<vmem>>, %arg10: memref<2x8xf32, #tpu.memory_space<vmem>>) attributes {dimension_semantics = [#tpu.dimension_semantics<parallel>], iteration_bounds = array<i64: 1>, scalar_prefetch = 0 : i64, scratch_operands = 0 : i64, tpu.core_type = #tpu.core_type<tc>, window_params = [{transform_indices = @transform_0, window_bounds = array<i64: 4, 8>}, {pipeline_mode = #tpu.pipeline_mode<synchronous>, transform_indices = @transform_1, window_bounds = array<i64: 128, 4>}, {pipeline_mode = #tpu.pipeline_mode<synchronous>, transform_indices = @transform_2, window_bounds = array<i64: 128, 1>}, {pipeline_mode = #tpu.pipeline_mode<synchronous>, transform_indices = @transform_3, window_bounds = array<i64: 64, 128>}, {pipeline_mode = #tpu.pipeline_mode<synchronous>, transform_indices = @transform_4, window_bounds = array<i64: 64, 1>}, {pipeline_mode = #tpu.pipeline_mode<synchronous>, transform_indices = @transform_5, window_bounds = array<i64: 64, 64>}, {pipeline_mode = #tpu.pipeline_mode<synchronous>, transform_indices = @transform_6, window_bounds = array<i64: 64, 1>}, {pipeline_mode = #tpu.pipeline_mode<synchronous>, transform_indices = @transform_7, window_bounds = array<i64: 2, 64>}, {pipeline_mode = #tpu.pipeline_mode<synchronous>, transform_indices = @transform_8, window_bounds = array<i64: 2, 1>}, {transform_indices = @transform_9, window_bounds = array<i64: 2, 8>}]} {
    %c0 = arith.constant 0 : index
    %c0_0 = arith.constant 0 : index
    %0 = vector.load %arg1[%c0, %c0_0] : memref<4x8xf32, #tpu.memory_space<vmem>>, vector<4x8xf32>
    %c0_1 = arith.constant 0 : index
    %c0_2 = arith.constant 0 : index
    %1 = vector.load %arg2[%c0_1, %c0_2] : memref<128x4xf32, #tpu.memory_space<vmem>>, vector<128x4xf32>
    %cst = arith.constant dense<0.000000e+00> : vector<128x8xf32>
    %2 = tpu.matmul %1, %0, %cst {dimension_numbers = #tpu.dot_dimension_numbers<[1], [0], [0], [1], [0, 0, 1, 1], [], []>} : vector<128x4xf32>, vector<4x8xf32>, vector<128x8xf32> -> vector<128x8xf32>
    %c0_3 = arith.constant 0 : index
    %c0_4 = arith.constant 0 : index
    %3 = vector.load %arg3[%c0_3, %c0_4] : memref<128x1xf32, #tpu.memory_space<vmem>>, vector<128x1xf32>
    %4 = vector.broadcast %3 : vector<128x1xf32> to vector<128x8xf32>
    %5 = arith.addf %2, %4 : vector<128x8xf32>
    %cst_5 = arith.constant 0.000000e+00 : f32
    %6 = vector.broadcast %cst_5 : f32 to vector<128x8xf32>
    %7 = arith.maximumf %5, %6 : vector<128x8xf32>
    %c0_6 = arith.constant 0 : index
    %c0_7 = arith.constant 0 : index
    %8 = vector.load %arg4[%c0_6, %c0_7] : memref<64x128xf32, #tpu.memory_space<vmem>>, vector<64x128xf32>
    %cst_8 = arith.constant dense<0.000000e+00> : vector<64x8xf32>
    %9 = tpu.matmul %8, %7, %cst_8 {dimension_numbers = #tpu.dot_dimension_numbers<[1], [0], [0], [1], [0, 0, 1, 1], [], []>} : vector<64x128xf32>, vector<128x8xf32>, vector<64x8xf32> -> vector<64x8xf32>
    %c0_9 = arith.constant 0 : index
    %c0_10 = arith.constant 0 : index
    %10 = vector.load %arg5[%c0_9, %c0_10] : memref<64x1xf32, #tpu.memory_space<vmem>>, vector<64x1xf32>
    %11 = vector.broadcast %10 : vector<64x1xf32> to vector<64x8xf32>
    %12 = arith.addf %9, %11 : vector<64x8xf32>
    %cst_11 = arith.constant 0.000000e+00 : f32
    %13 = vector.broadcast %cst_11 : f32 to vector<64x8xf32>
    %14 = arith.maximumf %12, %13 : vector<64x8xf32>
    %c0_12 = arith.constant 0 : index
    %c0_13 = arith.constant 0 : index
    %15 = vector.load %arg6[%c0_12, %c0_13] : memref<64x64xf32, #tpu.memory_space<vmem>>, vector<64x64xf32>
    %cst_14 = arith.constant dense<0.000000e+00> : vector<64x8xf32>
    %16 = tpu.matmul %15, %14, %cst_14 {dimension_numbers = #tpu.dot_dimension_numbers<[1], [0], [0], [1], [0, 0, 1, 1], [], []>} : vector<64x64xf32>, vector<64x8xf32>, vector<64x8xf32> -> vector<64x8xf32>
    %c0_15 = arith.constant 0 : index
    %c0_16 = arith.constant 0 : index
    %17 = vector.load %arg7[%c0_15, %c0_16] : memref<64x1xf32, #tpu.memory_space<vmem>>, vector<64x1xf32>
    %18 = vector.broadcast %17 : vector<64x1xf32> to vector<64x8xf32>
    %19 = arith.addf %16, %18 : vector<64x8xf32>
    %cst_17 = arith.constant 0.000000e+00 : f32
    %20 = vector.broadcast %cst_17 : f32 to vector<64x8xf32>
    %21 = arith.maximumf %19, %20 : vector<64x8xf32>
    %c0_18 = arith.constant 0 : index
    %c0_19 = arith.constant 0 : index
    %22 = vector.load %arg8[%c0_18, %c0_19] : memref<2x64xf32, #tpu.memory_space<vmem>>, vector<2x64xf32>
    %cst_20 = arith.constant dense<0.000000e+00> : vector<2x8xf32>
    %23 = tpu.matmul %22, %21, %cst_20 {dimension_numbers = #tpu.dot_dimension_numbers<[1], [0], [0], [1], [0, 0, 1, 1], [], []>} : vector<2x64xf32>, vector<64x8xf32>, vector<2x8xf32> -> vector<2x8xf32>
    %c0_21 = arith.constant 0 : index
    %c0_22 = arith.constant 0 : index
    %24 = vector.load %arg9[%c0_21, %c0_22] : memref<2x1xf32, #tpu.memory_space<vmem>>, vector<2x1xf32>
    %25 = vector.broadcast %24 : vector<2x1xf32> to vector<2x8xf32>
    %26 = arith.addf %23, %25 : vector<2x8xf32>
    %c0_23 = arith.constant 0 : index
    %c0_24 = arith.constant 0 : index
    %27 = vector.load %arg10[%c0_23, %c0_24] : memref<2x8xf32, #tpu.memory_space<vmem>>, vector<2x8xf32>
    tpu.vector_store %arg10[%c0_23, %c0_24], %26 {strides = array<i32>} : memref<2x8xf32, #tpu.memory_space<vmem>>, vector<2x8xf32>,
    return
  }
  func.func @transform_0(%arg0: i32) -> (i32, i32) {
    %c0_i32 = arith.constant 0 : i32
    %c0_i32_0 = arith.constant 0 : i32
    return %c0_i32, %arg0 : i32, i32
  }
  func.func @transform_1(%arg0: i32) -> (i32, i32) {
    %c0_i32 = arith.constant 0 : i32
    %c0_i32_0 = arith.constant 0 : i32
    %c0_i32_1 = arith.constant 0 : i32
    return %c0_i32, %c0_i32_0 : i32, i32
  }
  func.func @transform_2(%arg0: i32) -> (i32, i32) {
    %c0_i32 = arith.constant 0 : i32
    %c0_i32_0 = arith.constant 0 : i32
    %c0_i32_1 = arith.constant 0 : i32
    return %c0_i32, %c0_i32_0 : i32, i32
  }
  func.func @transform_3(%arg0: i32) -> (i32, i32) {
    %c0_i32 = arith.constant 0 : i32
    %c0_i32_0 = arith.constant 0 : i32
    %c0_i32_1 = arith.constant 0 : i32
    return %c0_i32, %c0_i32_0 : i32, i32
  }
  func.func @transform_4(%arg0: i32) -> (i32, i32) {
    %c0_i32 = arith.constant 0 : i32
    %c0_i32_0 = arith.constant 0 : i32
    %c0_i32_1 = arith.constant 0 : i32
    return %c0_i32, %c0_i32_0 : i32, i32
  }
  func.func @transform_5(%arg0: i32) -> (i32, i32) {
    %c0_i32 = arith.constant 0 : i32
    %c0_i32_0 = arith.constant 0 : i32
    %c0_i32_1 = arith.constant 0 : i32
    return %c0_i32, %c0_i32_0 : i32, i32
  }
  func.func @transform_6(%arg0: i32) -> (i32, i32) {
    %c0_i32 = arith.constant 0 : i32
    %c0_i32_0 = arith.constant 0 : i32
    %c0_i32_1 = arith.constant 0 : i32
    return %c0_i32, %c0_i32_0 : i32, i32
  }
  func.func @transform_7(%arg0: i32) -> (i32, i32) {
    %c0_i32 = arith.constant 0 : i32
    %c0_i32_0 = arith.constant 0 : i32
    %c0_i32_1 = arith.constant 0 : i32
    return %c0_i32, %c0_i32_0 : i32, i32
  }
  func.func @transform_8(%arg0: i32) -> (i32, i32) {
    %c0_i32 = arith.constant 0 : i32
    %c0_i32_0 = arith.constant 0 : i32
    %c0_i32_1 = arith.constant 0 : i32
    return %c0_i32, %c0_i32_0 : i32, i32
  }
  func.func @transform_9(%arg0: i32) -> (i32, i32) {
    %c0_i32 = arith.constant 0 : i32
    %c0_i32_0 = arith.constant 0 : i32
    return %c0_i32, %arg0 : i32, i32
  }
}

</mosaic_0001>

<bundles_post_ra>
// kernel: tpu_custom_call.1
= control target key start
LH: loop header
LB: loop body
LE: loop exit
PB: predicated region body
PF: predicated region fallthrough
CT: control target
= control target key end

     0   :  { %vm195_vm0 = vcmask 1043456   ;;  %vm146_vm1 = vcmask 31744   ;;  %v1119_v4 = vmov 0   ;;  %s1412_s0 = inlined_call_operand.vmem [shape: f32[4,8], index: 0, kind: input, shape index: {}]   ;;  %s1413_s1 = inlined_call_operand.vmem [shape: f32[128,4], index: 1, kind: input, shape index: {}]   ;;  %s1414_s2 = inlined_call_operand.vmem [shape: f32[128,1], index: 2, kind: input, shape index: {}]   ;;  %s1415_s3 = inlined_call_operand.vmem [shape: f32[64,128], index: 3, kind: input, shape index: {}]   ;;  %s1416_s4 = inlined_call_operand.vmem [shape: f32[64,1], index: 4, kind: input, shape index: {}]   ;;  %s1417_s5 = inlined_call_operand.vmem [shape: f32[64,64], index: 5, kind: input, shape index: {}]   ;;  %s1418_s6 = inlined_call_operand.vmem [shape: f32[64,1], index: 6, kind: input, shape index: {}]   ;;  %s1419_s7 = inlined_call_operand.vmem [shape: f32[2,64], index: 7, kind: input, shape index: {}]   ;;  %s1420_s8 = inlined_call_operand.vmem [shape: f32[2,1], index: 8, kind: input, shape index: {}]   ;;  %s1421_s9 = inlined_call_operand.hbm [shape: f32[2,8], index: 9, kind: output, shape index: {}]  }
   0x1   :  { %v33_v0 = vld [vmem:[%s1412_s0] sm:$0xf]  ;;  %v35_v2 = vld [vmem:[%s1413_s1 + $0x8] sm:$0xff]  ;;  %v36_v3 = vld [vmem:[%s1413_s1 + $0x10] sm:$0xff]  ;;  %1093 = vset.pattern.permute.xlu0 %v1119_v4  ;;  %1094 = vset.pattern.permute.xlu1 %v1119_v4 }
   0x2   :  { %v34_v1 = vld [vmem:[%s1413_s1] sm:$0xff]  ;;  %911 = vmatprep.subr.msk.mxu0 %vm195_vm0, %v33_v0  ;;  %v37_v6 = vld [vmem:[%s1413_s1 + $0x18] sm:$0xff]  ;;  %v51_v8 = vld [vmem:[%s1414_s2 + $0x8] sm:$0xff] }
   0x3   :  { %913 = vmatprep.mubr.msk.f32.mxu0 %vm146_vm1, %v34_v1  ;;  %912 = vmatpush3.msk.msra.mxu0 %vm195_vm0, %v33_v0  ;;  %v50_v5 = vld [vmem:[%s1414_s2] sm:$0xff]  ;;  %v52_v9 = vld [vmem:[%s1414_s2 + $0x10] sm:$0xff]  ;;  %v53_v10 = vld [vmem:[%s1414_s2 + $0x18] sm:$0xff] }
   0x4   :  { %914 = vmatmul.mubr.msk.f32.vlgmr.msra.gmra.mrb[0].mxu0 %vm146_vm1, %v35_v2  ;;  %68 = vperm.xlu0 %1093, %v50_v5   ;;  %v38_v7 = vld [vmem:[%s1413_s1 + $0x20] sm:$0xff]  ;;  %v39_v11 = vld [vmem:[%s1413_s1 + $0x28] sm:$0xff]  ;;  %v40_v12 = vld [vmem:[%s1413_s1 + $0x30] sm:$0xff] }
   0x5   :  { %916 = vmatprep.mubr.msk.f32.mxu0 %vm146_vm1, %v36_v3  ;;  %78 = vperm.xlu1 %1094, %v52_v9   ;;  %v54_v13 = vld [vmem:[%s1414_s2 + $0x20] sm:$0xff]  ;;  %v55_v14 = vld [vmem:[%s1414_s2 + $0x28] sm:$0xff]  ;;  %v41_v15 = vld [vmem:[%s1413_s1 + $0x38] sm:$0xff] }
   0x6   :  { %v42_v16 = vld [vmem:[%s1413_s1 + $0x40] sm:$0xff]  ;;  %v56_v17 = vld [vmem:[%s1414_s2 + $0x30] sm:$0xff]  ;;  %v57_v18 = vld [vmem:[%s1414_s2 + $0x38] sm:$0xff] }
   0x7   :  { %v43_v19 = vld [vmem:[%s1413_s1 + $0x48] sm:$0xff] }
   0x8   :  { %917 = vmatmul.mubr.msk.f32.gmra.mrb[2].mxu0 %vm146_vm1, %v37_v6  ;;  %73 = vperm.xlu0 %1093, %v51_v8  }
   0x9   :  { %919 = vmatprep.mubr.msk.f32.mxu0 %vm146_vm1, %v38_v7  ;;  %83 = vperm.xlu1 %1094, %v53_v10  }
   0xc   :  { %920 = vmatmul.mubr.msk.f32.gmra.mrb[4].mxu0 %vm146_vm1, %v39_v11  ;;  %88 = vperm.xlu0 %1093, %v54_v13  }
   0xd   :  { %922 = vmatprep.mubr.msk.f32.mxu0 %vm146_vm1, %v40_v12  ;;  %93 = vperm.xlu1 %1094, %v55_v14  }
  0x10   :  { %923 = vmatmul.mubr.msk.f32.gmra.mrb[6].mxu0 %vm146_vm1, %v41_v15  ;;  %98 = vperm.xlu0 %1093, %v56_v17  }
  0x11   :  { %925 = vmatprep.mubr.msk.f32.mxu0 %vm146_vm1, %v42_v16 }
  0x12   :  { %14 = vsyncpa [#allocation3], 0  ;;  %v44_v20 = vld [vmem:[%s1413_s1 + $0x50] sm:$0xff]  ;;  %v58_v21 = vld [vmem:[%s1414_s2 + $0x40] sm:$0xff]  ;;  %103 = vperm.xlu1 %1094, %v57_v18   ;;  %vm585_vm2 = vcmask 523264   ;;  %vm1121_vm3 = vmmov 0  }
  0x13   :  { %v59_v22 = vld [vmem:[%s1414_s2 + $0x48] sm:$0xff]  ;;  %v45_v23 = vld [vmem:[%s1413_s1 + $0x58] sm:$0xff]  ;;  %v46_v24 = vld [vmem:[%s1413_s1 + $0x60] sm:$0xff]  ;;  %s1123_s18 = smov [#allocation2]   ;;  %vm803_vm4 = vcmask 58368  }
  0x14   :  { %926 = vmatmul.mubr.msk.f32.gmra.mrb[8].mxu0 %vm146_vm1, %v43_v19  ;;  %108 = vperm.xlu0 %1093, %v58_v21   ;;  %v60_v25 = vld [vmem:[%s1414_s2 + $0x50] sm:$0xff]  ;;  %v61_v26 = vld [vmem:[%s1414_s2 + $0x58] sm:$0xff]  ;;  %v47_v27 = vld [vmem:[%s1413_s1 + $0x68] sm:$0xff]  ;;  %s811_s19 = sshll.u32 %s1123_s18, 4  ;;  %s812_s19 = int_to_ptr.vmem [resolvable:$true] %s811_s19 }
  0x15   :  { %928 = vmatprep.mubr.msk.f32.mxu0 %vm146_vm1, %v44_v20  ;;  %v48_v28 = vld [vmem:[%s1413_s1 + $0x70] sm:$0xff]  ;;  %v62_v29 = vld [vmem:[%s1414_s2 + $0x60] sm:$0xff]  ;;  %v63_v30 = vld [vmem:[%s1414_s2 + $0x68] sm:$0xff]  ;;  %s1095_s20 = scalar_lea.vmem %s812_s19, 32  ;;  %p1100_p1 = scmp.lt.s32.totalorder %s812_s19, %s812_s19 }
  0x16   :  { %113 = vperm.xlu1 %1094, %v59_v22   ;;  %v49_v31 = vld [vmem:[%s1413_s1 + $0x78] sm:$0xff]  ;;  %v64_v32 = vld [vmem:[%s1414_s2 + $0x70] sm:$0xff]  ;;  %v368_v34 = vld [vmem:[%s1416_s4] sm:$0xff]  ;;  %p1096_p0 = scmp.ne.s32.totalorder %s812_s19, %s1095_s20  ;;  %p1101_p2 = scmp.lt.s32.totalorder %s1095_s20, %s1095_s20 }
  0x17   :  { %v65_v33 = vld [vmem:[%s1414_s2 + $0x78] sm:$0xff]  ;;  %v369_v35 = vld [vmem:[%s1416_s4 + $0x8] sm:$0xff]  ;;  %v370_v36 = vld [vmem:[%s1416_s4 + $0x10] sm:$0xff] }
  0x18   :  { %929 = vmatmul.mubr.msk.f32.gmra.mrb[10].mxu0 %vm146_vm1, %v45_v23  ;;  %118 = vperm.xlu0 %1093, %v60_v25   ;;  %v371_v37 = vld [vmem:[%s1416_s4 + $0x18] sm:$0xff]  ;;  %v372_v38 = vld [vmem:[%s1416_s4 + $0x20] sm:$0xff]  ;;  %v373_v39 = vld [vmem:[%s1416_s4 + $0x28] sm:$0xff]  ;;  %p1102_p3 = por %p1101_p2, %p1100_p1 }
  0x19   :  { %931 = vmatprep.mubr.msk.f32.mxu0 %vm146_vm1, %v46_v24  ;;  %v374_v40 = vld [vmem:[%s1416_s4 + $0x30] sm:$0xff]  ;;  %v375_v41 = vld [vmem:[%s1416_s4 + $0x38] sm:$0xff]  ;;  %v537_v42 = vld [vmem:[%s1418_s6] sm:$0xff] }
  0x1a   :  { %123 = vperm.xlu1 %1094, %v61_v26   ;;  %v538_v43 = vld [vmem:[%s1418_s6 + $0x8] sm:$0xff]  ;;  %v539_v44 = vld [vmem:[%s1418_s6 + $0x10] sm:$0xff]  ;;  %v540_v45 = vld [vmem:[%s1418_s6 + $0x18] sm:$0xff]  ;;  %p1103_p4 = pnand %p1102_p3, %p1096_p0 }
  0x1b   :  { %v541_v46 = vld [vmem:[%s1418_s6 + $0x20] sm:$0xff]  ;;  %v542_v47 = vld [vmem:[%s1418_s6 + $0x28] sm:$0xff]  ;;  %v543_v48 = vld [vmem:[%s1418_s6 + $0x30] sm:$0xff] }
  0x1c   :  { %932 = vmatmul.mubr.msk.f32.gmra.mrb[12].mxu0 %vm146_vm1, %v47_v27  ;;  %128 = vperm.xlu0 %1093, %v62_v29   ;;  %v544_v49 = vld [vmem:[%s1418_s6 + $0x38] sm:$0xff]  ;;  %v724_v50 = vld [vmem:[%s1420_s8] sm:$0x3] }
  0x1d   :  { %934 = vmatprep.mubr.msk.f32.mxu0 %vm146_vm1, %v48_v28  ;;  %v360_v51 = vld [vmem:[%s1415_s3] sm:$0xff] }
  0x1e   :  { %133 = vperm.xlu1 %1094, %v63_v30   ;;  %969 = vmatprep.mubr.f32.mxu1 %v360_v51 }
  0x20   :  { %935 = vmatmul.mubr.msk.f32.gmra.mrb[14].mxu0 %vm146_vm1, %v49_v31  ;;  %138 = vperm.xlu0 %1093, %v64_v32  }
  0x22   :  { %143 = vperm.xlu1 %1094, %v65_v33  }
  0x24   :  { %378 = vperm.xlu0 %1093, %v368_v34  }
  0x26   :  { %383 = vperm.xlu1 %1094, %v369_v35  }
  0x28   :  { %388 = vperm.xlu0 %1093, %v370_v36  }
  0x2a   :  { %393 = vperm.xlu1 %1094, %v371_v37  }
  0x2c   :  { %398 = vperm.xlu0 %1093, %v372_v38  }
  0x2e   :  { %403 = vperm.xlu1 %1094, %v373_v39  }
  0x30   :  { %408 = vperm.xlu0 %1093, %v374_v40  }
  0x32   :  { %413 = vperm.xlu1 %1094, %v375_v41  }
  0x34   :  { %547 = vperm.xlu0 %1093, %v537_v42  }
  0x36   :  { %552 = vperm.xlu1 %1094, %v538_v43  }
  0x38   :  { %557 = vperm.xlu0 %1093, %v539_v44  }
  0x3a   :  { %562 = vperm.xlu1 %1094, %v540_v45  }
  0x3c   :  { %567 = vperm.xlu0 %1093, %v541_v46  }
  0x3e   :  { %572 = vperm.xlu1 %1094, %v542_v47  }
  0x40   :  { %577 = vperm.xlu0 %1093, %v543_v48  }
  0x42   :  { %582 = vperm.xlu1 %1094, %v544_v49  }
  0x44   :  { %727 = vperm.xlu0 %1093, %v724_v50  }
  0x83   :  { %v69_v53 = vpop.permute.xlu0 %68 }
  0x84   :  { %v79_v52 = vpop.permute.xlu1 %78 }
  0x87   :  { %v74_v55 = vpop.permute.xlu0 %73 }
  0x88   :  { %v84_v54 = vpop.permute.xlu1 %83 }
  0x8b   :  { %v89_v57 = vpop.permute.xlu0 %88 }
  0x8c   :  { %v94_v56 = vpop.permute.xlu1 %93 }
  0x8f   :  { %v99_v2 = vpop.permute.xlu0 %98 }
  0x91   :  { %v104_v63 = vpop.permute.xlu1 %103 }
  0x93   :  { %v109_v15 = vpop.permute.xlu0 %108 }
  0x95   :  { %v114_v12 = vpop.permute.xlu1 %113 }
  0x97   :  { %v119_v27 = vpop.permute.xlu0 %118 }
  0x99   :  { %v124_v24 = vpop.permute.xlu1 %123 }
  0x9b   :  { %v129_v40 = vpop.permute.xlu0 %128 }
  0x9d   :  { %v134_v37 = vpop.permute.xlu1 %133 }
  0xa1   :  { %v144_v49 = vpop.permute.xlu1 %143 }
  0xd7   :  { %v915_v58 = vpop.f32.mrb[0].mxu0 }
  0xd8   :  { %v271_v59 = vadd.f32 %v915_v58, %v74_v55  ;;  %v265_v60 = vpop.f32.mrb[1].mxu0 }
  0xd9   :  { %v266_v61 = vadd.f32 %v265_v60, %v69_v53  ;;  %v361_v60 = vld [vmem:[%s1415_s3 + $0x8] sm:$0xff] }
  0xda   :  { %v345_v62 = vmax.f32 %v271_v59, 0.0 }
  0xdb   :  { %v344_v0 = vmax.f32 %v266_v61, 0.0  ;;  %v918_v1 = vpop.f32.mrb[2].mxu0  ;;  %v362_v61 = vld [vmem:[%s1415_s3 + $0x10] sm:$0xff] }
  0xdc   :  { %v281_v3 = vadd.f32 %v918_v1, %v84_v54  ;;  %v275_v4 = vpop.f32.mrb[3].mxu0  ;;  %v366_v1 = vld [vmem:[%s1415_s3 + $0x30] sm:$0xff] }
  0xdd   :  { %v276_v5 = vadd.f32 %v275_v4, %v79_v52  ;;  %v1028_v6 = vpack.c.bf16 %v345_v62, %v344_v0  ;;  %v139_v52 = vpop.permute.xlu0 %138  ;;  %v363_v62 = vld [vmem:[%s1415_s3 + $0x18] sm:$0xff]  ;;  %v365_v0 = vld [vmem:[%s1415_s3 + $0x28] sm:$0xff]  ;;  %v384_v4 = vpop.permute.xlu1 %383 }
  0xde   :  { %v347_v7 = vmax.f32 %v281_v3, 0.0  ;;  %v529_v3 = vld [vmem:[%s1417_s5] sm:$0xff] }
  0xdf   :  { %v346_v8 = vmax.f32 %v276_v5, 0.0  ;;  %v921_v9 = vpop.f32.mrb[4].mxu0  ;;  %1029 = vmatprep.subr.bf16.mxu1 %v1028_v6  ;;  %997 = vmatprep.mubr.msk.f32.mxu0 %vm585_vm2, %v529_v3 }
  0xe0   :  { %v291_v10 = vadd.f32 %v921_v9, %v94_v56  ;;  %v285_v11 = vpop.f32.mrb[5].mxu0  ;;  %1031 = vmatpush3.bf16.msra.mxu1 %v1028_v6 }
  0xe1   :  { %v1032_v13 = vpack.c.bf16 %v347_v7, %v346_v8  ;;  %v286_v14 = vadd.f32 %v285_v11, %v89_v57  ;;  %v379_v5 = vpop.permute.xlu0 %378  ;;  %v394_v6 = vpop.permute.xlu1 %393 }
  0xe2   :  { %v349_v16 = vmax.f32 %v291_v10, 0.0 }
  0xe3   :  { %v348_v17 = vmax.f32 %v286_v14, 0.0  ;;  %v924_v18 = vpop.f32.mrb[6].mxu0  ;;  %1033 = vmatprep.subr.bf16.mxu1 %v1032_v13 }
  0xe4   :  { %v301_v19 = vadd.f32 %v924_v18, %v104_v63  ;;  %v295_v20 = vpop.f32.mrb[7].mxu0  ;;  %1035 = vmatpush3.bf16.msra.mxu1 %v1032_v13  ;;  %v364_v63 = vld [vmem:[%s1415_s3 + $0x20] sm:$0xff] }
  0xe5   :  { %v1036_v21 = vpack.c.bf16 %v349_v16, %v348_v17  ;;  %v296_v22 = vadd.f32 %v295_v20, %v99_v2  ;;  %v367_v2 = vld [vmem:[%s1415_s3 + $0x38] sm:$0xff]  ;;  %v389_v8 = vpop.permute.xlu0 %388  ;;  %v404_v17 = vpop.permute.xlu1 %403 }
  0xe6   :  { %v351_v23 = vmax.f32 %v301_v19, 0.0 }
  0xe7   :  { %v350_v25 = vmax.f32 %v296_v22, 0.0  ;;  %v927_v26 = vpop.f32.mrb[8].mxu0  ;;  %1037 = vmatprep.subr.bf16.mxu1 %v1036_v21 }
  0xe8   :  { %v311_v28 = vadd.f32 %v927_v26, %v114_v12  ;;  %v305_v29 = vpop.f32.mrb[9].mxu0  ;;  %1039 = vmatpush3.bf16.msra.mxu1 %v1036_v21 }
  0xe9   :  { %v1040_v30 = vpack.c.bf16 %v351_v23, %v350_v25  ;;  %v306_v31 = vadd.f32 %v305_v29, %v109_v15  ;;  %v399_v20 = vpop.permute.xlu0 %398  ;;  %v414_v29 = vpop.permute.xlu1 %413 }
  0xea   :  { %v353_v32 = vmax.f32 %v311_v28, 0.0 }
  0xeb   :  { %v352_v33 = vmax.f32 %v306_v31, 0.0  ;;  %v930_v34 = vpop.f32.mrb[10].mxu0  ;;  %1041 = vmatprep.subr.bf16.mxu1 %v1040_v30 }
  0xec   :  { %v321_v35 = vadd.f32 %v930_v34, %v124_v24  ;;  %v315_v36 = vpop.f32.mrb[11].mxu0  ;;  %1043 = vmatpush3.bf16.msra.mxu1 %v1040_v30 }
  0xed   :  { %v1044_v38 = vpack.c.bf16 %v353_v32, %v352_v33  ;;  %v316_v39 = vadd.f32 %v315_v36, %v119_v27  ;;  %v409_v32 = vpop.permute.xlu0 %408 }
  0xee   :  { %v355_v41 = vmax.f32 %v321_v35, 0.0 }
  0xef   :  { %v354_v42 = vmax.f32 %v316_v39, 0.0  ;;  %v933_v43 = vpop.f32.mrb[12].mxu0  ;;  %1045 = vmatprep.subr.bf16.mxu1 %v1044_v38 }
  0xf0   :  { %v331_v44 = vadd.f32 %v933_v43, %v134_v37  ;;  %v325_v45 = vpop.f32.mrb[13].mxu0  ;;  %1047 = vmatpush3.bf16.msra.mxu1 %v1044_v38  ;;  %v533_v43 = vld [vmem:[%s1417_s5 + $0x20] sm:$0xff] }
  0xf1   :  { %v1048_v46 = vpack.c.bf16 %v355_v41, %v354_v42  ;;  %v326_v47 = vadd.f32 %v325_v45, %v129_v40  ;;  %v530_v40 = vld [vmem:[%s1417_s5 + $0x8] sm:$0xff]  ;;  %v531_v41 = vld [vmem:[%s1417_s5 + $0x10] sm:$0xff]  ;;  %v532_v42 = vld [vmem:[%s1417_s5 + $0x18] sm:$0xff] }
  0xf2   :  { %v357_v48 = vmax.f32 %v331_v44, 0.0  ;;  %v534_v44 = vld [vmem:[%s1417_s5 + $0x28] sm:$0xff]  ;;  %v535_v45 = vld [vmem:[%s1417_s5 + $0x30] sm:$0xff] }
  0xf3   :  { %v356_v50 = vmax.f32 %v326_v47, 0.0  ;;  %v936_v51 = vpop.f32.mrb[14].mxu0  ;;  %1049 = vmatprep.subr.bf16.mxu1 %v1048_v46  ;;  %v1120_v47 = vmov 0.0|0.0  }
  0xf4   :  { %v341_v53 = vadd.f32 %v936_v51, %v144_v49  ;;  %v335_v54 = vpop.f32.mrb[15].mxu0  ;;  %1051 = vmatpush3.bf16.msra.mxu1 %v1048_v46  ;;  %v536_v46 = vld [vmem:[%s1417_s5 + $0x38] sm:$0xff]  ;;  %v553_v49 = vpop.permute.xlu1 %552 }
  0xf5   :  { %v1052_v55 = vpack.c.bf16 %v357_v48, %v356_v50  ;;  %v336_v56 = vadd.f32 %v335_v54, %v139_v52  ;;  %v1122_v48 = vmov 0.0   ;;  %v548_v50 = vpop.permute.xlu0 %547 }
  0xf6   :  { %v359_v57 = vmax.f32 %v341_v53, 0.0 }
  0xf7   :  { %v358_v58 = vmax.f32 %v336_v56, 0.0  ;;  %1053 = vmatprep.subr.bf16.mxu1 %v1052_v55 }
  0xf8   :  { %1055 = vmatpush3.bf16.msra.mxu1 %v1052_v55  ;;  %v563_v51 = vpop.permute.xlu1 %562 }
  0xf9   :  { %v1056_v59 = vpack.c.bf16 %v359_v57, %v358_v58  ;;  %v558_v53 = vpop.permute.xlu0 %557 }
  0xfb   :  { %1057 = vmatprep.subr.bf16.mxu1 %v1056_v59 }
  0xfc   :  { %1059 = vmatpush3.bf16.msra.mxu1 %v1056_v59 }
  0xfd   :  { %1076 = vmatprep.subr.bf16.mxu1 %v1120_v47 }
  0xff   :  { %970 = vmatmul.mubr.f32.vlgmr.msra.gmra.mrb[0].mxu1 %v361_v60 }
 0x100   :  { %972 = vmatprep.mubr.f32.mxu1 %v362_v61 }
 0x103   :  { %973 = vmatmul.mubr.f32.gmra.mrb[2].mxu1 %v363_v62  ;;  %v573_v62 = vpop.permute.xlu1 %572 }
 0x104   :  { %975 = vmatprep.mubr.f32.mxu1 %v364_v63 }
 0x107   :  { %976 = vmatmul.mubr.f32.gmra.mrb[4].mxu1 %v365_v0 }
 0x108   :  { %978 = vmatprep.mubr.f32.mxu1 %v366_v1  ;;  %v568_v1 = vpop.permute.xlu0 %567 }
 0x10b   :  { %979 = vmatmul.mubr.f32.gmra.mrb[6].mxu1 %v367_v2 }
 0x10c   :  { %1025 = vmatprep.mubr.msk.f32.mxu1 %vm1121_vm3, %v1122_v48 }
 0x1d2   :  { %v971_v7 = vpop.f32.mrb[0].mxu1 }
 0x1d3   :  { %v488_v9 = vadd.f32 %v971_v7, %v384_v4  ;;  %v482_v10 = vpop.f32.mrb[1].mxu1 }
 0x1d4   :  { %v483_v11 = vadd.f32 %v482_v10, %v379_v5  ;;  %v583_v10 = vpop.permute.xlu1 %582 }
 0x1d5   :  { %v522_v12 = vmax.f32 %v488_v9, 0.0 }
 0x1d6   :  { %v521_v13 = vmax.f32 %v483_v11, 0.0  ;;  %v974_v14 = vpop.f32.mrb[2].mxu1 }
 0x1d7   :  { %v498_v15 = vadd.f32 %v974_v14, %v394_v6  ;;  %v492_v16 = vpop.f32.mrb[3].mxu1 }
 0x1d8   :  { %v1060_v18 = vpack.c.bf16 %v522_v12, %v521_v13  ;;  %v493_v19 = vadd.f32 %v492_v16, %v389_v8  ;;  %v578_v13 = vpop.permute.xlu0 %577 }
 0x1d9   :  { %v524_v21 = vmax.f32 %v498_v15, 0.0 }
 0x1da   :  { %v523_v22 = vmax.f32 %v493_v19, 0.0  ;;  %v977_v23 = vpop.f32.mrb[4].mxu1  ;;  %1061 = vmatprep.subr.bf16.mxu0 %v1060_v18 }
 0x1db   :  { %v508_v24 = vadd.f32 %v977_v23, %v404_v17  ;;  %v502_v25 = vpop.f32.mrb[5].mxu1  ;;  %1063 = vmatpush3.bf16.msra.mxu0 %v1060_v18 }
 0x1dc   :  { %v1064_v26 = vpack.c.bf16 %v524_v21, %v523_v22  ;;  %v503_v27 = vadd.f32 %v502_v25, %v399_v20  ;;  %v723_v21 = vld [vmem:[%s1419_s7] sm:$0x3]  ;;  %v728_v22 = vpop.permute.xlu0 %727 }
 0x1dd   :  { %v526_v28 = vmax.f32 %v508_v24, 0.0 }
 0x1de   :  { %v525_v30 = vmax.f32 %v503_v27, 0.0  ;;  %v980_v31 = vpop.f32.mrb[6].mxu1  ;;  %1065 = vmatprep.subr.bf16.mxu0 %v1064_v26 }
 0x1df   :  { %v518_v33 = vadd.f32 %v980_v31, %v414_v29  ;;  %v512_v34 = vpop.f32.mrb[7].mxu1  ;;  %1067 = vmatpush3.bf16.msra.mxu0 %v1064_v26 }
 0x1e0   :  { %v1068_v35 = vpack.c.bf16 %v526_v28, %v525_v30  ;;  %v513_v36 = vadd.f32 %v512_v34, %v409_v32 }
 0x1e1   :  { %v528_v37 = vmax.f32 %v518_v33, 0.0 }
 0x1e2   :  { %v527_v38 = vmax.f32 %v513_v36, 0.0  ;;  %1069 = vmatprep.subr.bf16.mxu0 %v1068_v35 }
 0x1e3   :  { %1071 = vmatpush3.bf16.msra.mxu0 %v1068_v35 }
 0x1e4   :  { %v1072_v39 = vpack.c.bf16 %v528_v37, %v527_v38 }
 0x1e6   :  { %1073 = vmatprep.subr.bf16.mxu0 %v1072_v39 }
 0x1e7   :  { %1075 = vmatpush3.bf16.msra.mxu0 %v1072_v39 }
 0x1ea   :  { %998 = vmatmul.mubr.msk.f32.vlgmr.msra.gmra.mrb[16].mxu0 %vm585_vm2, %v530_v40 }
 0x1eb   :  { %1000 = vmatprep.mubr.msk.f32.mxu0 %vm585_vm2, %v531_v41 }
 0x1ee   :  { %1001 = vmatmul.mubr.msk.f32.gmra.mrb[18].mxu0 %vm585_vm2, %v532_v42 }
 0x1ef   :  { %1003 = vmatprep.mubr.msk.f32.mxu0 %vm585_vm2, %v533_v43 }
 0x1f2   :  { %1004 = vmatmul.mubr.msk.f32.gmra.mrb[20].mxu0 %vm585_vm2, %v534_v44 }
 0x1f3   :  { %1006 = vmatprep.mubr.msk.f32.mxu0 %vm585_vm2, %v535_v45 }
 0x1f6   :  { %1007 = vmatmul.mubr.msk.f32.gmra.mrb[22].mxu0 %vm585_vm2, %v536_v46 }
 0x2bd   :  { %v999_v52 = vpop.f32.mrb[16].mxu0 }
 0x2be   :  { %v682_v54 = vadd.f32 %v999_v52, %v553_v49  ;;  %v676_v55 = vpop.f32.mrb[17].mxu0 }
 0x2bf   :  { %v677_v56 = vadd.f32 %v676_v55, %v548_v50 }
 0x2c0   :  { %v716_v57 = vmax.f32 %v682_v54, 0.0 }
 0x2c1   :  { %v715_v58 = vmax.f32 %v677_v56, 0.0  ;;  %v1002_v59 = vpop.f32.mrb[18].mxu0 }
 0x2c2   :  { %v692_v60 = vadd.f32 %v1002_v59, %v563_v51  ;;  %v686_v61 = vpop.f32.mrb[19].mxu0 }
 0x2c3   :  { %v1077_v63 = vpack.c.bf16 %v716_v57, %v715_v58  ;;  %v687_v0 = vadd.f32 %v686_v61, %v558_v53 }
 0x2c4   :  { %v718_v2 = vmax.f32 %v692_v60, 0.0 }
 0x2c5   :  { %v717_v3 = vmax.f32 %v687_v0, 0.0  ;;  %v1005_v4 = vpop.f32.mrb[20].mxu0  ;;  %1078 = vmatpush3.bf16.msra.mxu1 %v1077_v63 }
 0x2c6   :  { %v702_v5 = vadd.f32 %v1005_v4, %v573_v62  ;;  %v696_v6 = vpop.f32.mrb[21].mxu0  ;;  %1079 = vmatprep.subr.bf16.mxu1 %v1120_v47 }
 0x2c7   :  { %v1080_v7 = vpack.c.bf16 %v718_v2, %v717_v3  ;;  %v697_v8 = vadd.f32 %v696_v6, %v568_v1 }
 0x2c8   :  { %v720_v9 = vmax.f32 %v702_v5, 0.0 }
 0x2c9   :  { %v719_v11 = vmax.f32 %v697_v8, 0.0  ;;  %v1008_v12 = vpop.f32.mrb[22].mxu0  ;;  %1081 = vmatpush3.bf16.msra.mxu1 %v1080_v7 }
 0x2ca   :  { %v712_v14 = vadd.f32 %v1008_v12, %v583_v10  ;;  %v706_v15 = vpop.f32.mrb[23].mxu0  ;;  %1082 = vmatprep.subr.bf16.mxu1 %v1120_v47 }
 0x2cb   :  { %v1083_v16 = vpack.c.bf16 %v720_v9, %v719_v11  ;;  %v707_v17 = vadd.f32 %v706_v15, %v578_v13 }
 0x2cc   :  { %v722_v18 = vmax.f32 %v712_v14, 0.0 }
 0x2cd   :  { %v721_v19 = vmax.f32 %v707_v17, 0.0  ;;  %1084 = vmatpush3.bf16.msra.mxu1 %v1083_v16 }
 0x2ce   :  { %1085 = vmatprep.subr.bf16.mxu1 %v1120_v47 }
 0x2cf   :  { %v1086_v20 = vpack.c.bf16 %v722_v18, %v721_v19 }
 0x2d1   :  { %1087 = vmatpush3.bf16.msra.mxu1 %v1086_v20 }
 0x2d4   :  { %1026 = vmatmul.mubr.msk.f32.vlgmr.msra.gmra.mrb[8].mxu1 %vm585_vm2, %v723_v21 }
 0x3a7   :  { %v799_v23 = vpop.f32.mrb[8].mxu1 }
 0x3a8   :  { %v800_v24 = vadd.f32 %v799_v23, %v728_v22  ;;  %v1027_v25 = vpop.f32.mrb[9].mxu1 }
 0x3aa   :  { %804 = vst.msk [vmem:[#allocation2] sm:$0x3] %vm803_vm4, %v800_v24 }
 0x3ab   :  { %1106 = shalt.err (!%p1103_p4)
}
 0x3ac   :  { %s1107_s22 = scalar_lea.hbm %s1421_s9, 32 }
 0x3ad   :  { %p1108_p5 = scmp.ne.s32.totalorder %s1421_s9, %s1107_s22  ;;  %p1111_p6 = scmp.lt.u32.totalorder %s1107_s22, %s1421_s9 }
 0x3af   :  { %p1113_p7 = pnand %p1111_p6, %p1108_p5 }
 0x3b1   :  { %1116 = shalt.err (!%p1113_p7)
}
 0x3b2   :  { %814 = dma.vmem_to_hbm [thread:$0]  %s812_s19, 32, %s1421_s9, [#allocation3]  }
 0x3b3   :  { %1117 = dma.done.wait [#allocation3], 32  }
 0x3b4   :  { %1118 = vsyncadd [#allocation3], 4294967264 }
 0x3b5   :  { %818 = vsyncpa [#allocation3], 1 }

</bundles_post_ra>
